<compile_context>
chip_gen: v7x
topology: tpu7x:2x2x1
jax: 0.10.0
libtpu: 0.0.40
codegen_flags: <defaults>
</compile_context>

<pallas_src>
import functools

import jax
import jax.numpy as jnp
from jax.experimental import pallas as pl
from jax.experimental.pallas import tpu as pltpu


def _concat_linear_kernel(emb_ref, z_ref, w_ref, b_ref, out_ref, x_scratch):
    """out = concat(emb, z) @ W + b, with the concat staged in VMEM scratch."""
    E = emb_ref.shape[-1]
    Z = z_ref.shape[-1]
    # "Concat" = two cheap VMEM stores into one scratch tile (no HBM concat),
    # then one fused K = E+Z MXU pass instead of two small-K passes.
    x_scratch[:, :E] = emb_ref[...]
    x_scratch[:, E:E + Z] = z_ref[...]
    acc = jnp.dot(x_scratch[...], w_ref[...], preferred_element_type=jnp.float32)
    acc = acc + b_ref[...].astype(jnp.float32)   # (1, tn) broadcast over rows
    out_ref[...] = acc.astype(out_ref.dtype)


def prepare_params(weight, bias):
    """One-time (init) conversion of torch-layout nn.Linear parameters.

    weight: (O, E+Z) torch layout  ->  w_t: (E+Z, O)
    bias:   (O,)                   ->  (1, O)
    Doing this once here keeps the per-call path free of HBM transposes.
    """
    return weight.T, bias.reshape(1, -1)


@functools.partial(jax.jit, static_argnames=("block_m", "block_n"))
def concat_embedding_latent_z(embedding, latent_z, w_t, bias2d,
                              *, block_m=256, block_n=512):
    """embedding: (B, E), latent_z: (B, Z), w_t: (E+Z, O), bias2d: (1, O)."""
    B, E = embedding.shape
    _, Z = latent_z.shape
    K, O = w_t.shape
    assert K == E + Z and bias2d.shape == (1, O)

    # Tile sizes: full extent for small dims (always a legal block shape),
    # otherwise 8-aligned row tiles and lane-dense (multiple-of-128, up to
    # 512-wide) column tiles.  Double-buffered footprint stays well under
    # v7x's 64 MiB VMEM, so no explicit vmem_limit_bytes is needed.
    tm = B if B <= block_m else block_m
    tn = O if O <= block_n else block_n
    grid = (pl.cdiv(B, tm), pl.cdiv(O, tn))

    return pl.pallas_call(
        _concat_linear_kernel,
        out_shape=jax.ShapeDtypeStruct((B, O), embedding.dtype),
        grid=grid,
        in_specs=[
            pl.BlockSpec((tm, E), lambda i, j: (i, 0)),   # embedding rows
            pl.BlockSpec((tm, Z), lambda i, j: (i, 0)),   # latent_z rows
            pl.BlockSpec((K, tn), lambda i, j: (0, j)),   # fused weight cols
            pl.BlockSpec((1, tn), lambda i, j: (0, j)),   # bias cols
        ],
        out_specs=pl.BlockSpec((tm, tn), lambda i, j: (i, j)),
        scratch_shapes=[pltpu.VMEM((tm, K), embedding.dtype)],
        compiler_params=pltpu.CompilerParams(
            # Both grid axes independent -> megacore sharding on v7x,
            # neutral on single-TC v5e/v6e.
            dimension_semantics=("parallel", "parallel"),
        ),
    )(embedding, latent_z, w_t, bias2d)


if __name__ == "__main__":
    # Small shapes consistent with the module.
    B = 2            # batch
    E = 32           # embedding_size
    Z = 16           # latent_z_size
    O = 64           # output_size

    key = jax.random.PRNGKey(0)
    k_emb, k_z, k_w, k_b = jax.random.split(key, 4)

    embedding = jax.random.normal(k_emb, (B, E), dtype=jnp.float32)
    latent_z = jax.random.normal(k_z, (B, Z), dtype=jnp.float32)

    # Deterministic init mimicking nn.Linear: U(-1/sqrt(fan_in), 1/sqrt(fan_in))
    fan_in = E + Z
    bound = 1.0 / jnp.sqrt(jnp.float32(fan_in))
    weight = jax.random.uniform(k_w, (O, fan_in), minval=-bound, maxval=bound,
                                dtype=jnp.float32)
    bias = jax.random.uniform(k_b, (O,), minval=-bound, maxval=bound,
                              dtype=jnp.float32)

    # One-time parameter prep (init-time), NOT in the per-call path.
    w_t, bias2d = prepare_params(weight, bias)

    out = concat_embedding_latent_z(embedding, latent_z, w_t, bias2d)
    out = jax.block_until_ready(out)

    # Reference check (pure JAX) against concat + linear semantics.
    ref = jnp.concatenate([embedding, latent_z], axis=1) @ weight.T + bias
    assert out.shape == (B, O)
    assert jnp.allclose(out, ref, atol=1e-5, rtol=1e-5)

    print("KERNEL_OK")
</pallas_src>

<mosaic_0001>
module attributes {stable_mosaic.version = 11 : i64} {
  func.func @_concat_linear_kernel(%arg0: i32, %arg1: i32, %arg2: memref<2x32xf32, #tpu.memory_space<vmem>>, %arg3: memref<2x16xf32, #tpu.memory_space<vmem>>, %arg4: memref<48x64xf32, #tpu.memory_space<vmem>>, %arg5: memref<1x64xf32, #tpu.memory_space<vmem>>, %arg6: memref<2x64xf32, #tpu.memory_space<vmem>>, %arg7: memref<2x48xf32, #tpu.memory_space<vmem>>) attributes {dimension_semantics = [#tpu.dimension_semantics<parallel>, #tpu.dimension_semantics<parallel>], iteration_bounds = array<i64: 1, 1>, scalar_prefetch = 0 : i64, scratch_operands = 1 : i64, tpu.core_type = #tpu.core_type<tc>, window_params = [{transform_indices = @transform_0, window_bounds = array<i64: 2, 32>}, {transform_indices = @transform_1, window_bounds = array<i64: 2, 16>}, {transform_indices = @transform_2, window_bounds = array<i64: 48, 64>}, {transform_indices = @transform_3, window_bounds = array<i64: 1, 64>}, {transform_indices = @transform_4, window_bounds = array<i64: 2, 64>}]} {
    %c0 = arith.constant 0 : index
    %c0_0 = arith.constant 0 : index
    %0 = vector.load %arg2[%c0, %c0_0] : memref<2x32xf32, #tpu.memory_space<vmem>>, vector<2x32xf32>
    %c0_1 = arith.constant 0 : index
    %c0_2 = arith.constant 0 : index
    %1 = vector.load %arg7[%c0_1, %c0_2] : memref<2x48xf32, #tpu.memory_space<vmem>>, vector<2x32xf32>
    tpu.vector_store %arg7[%c0_1, %c0_2], %0 {strides = array<i32>} : memref<2x48xf32, #tpu.memory_space<vmem>>, vector<2x32xf32>,
    %c0_3 = arith.constant 0 : index
    %c0_4 = arith.constant 0 : index
    %2 = vector.load %arg3[%c0_3, %c0_4] : memref<2x16xf32, #tpu.memory_space<vmem>>, vector<2x16xf32>
    %c0_5 = arith.constant 0 : index
    %c32 = arith.constant 32 : index
    %3 = vector.load %arg7[%c0_5, %c32] : memref<2x48xf32, #tpu.memory_space<vmem>>, vector<2x16xf32>
    tpu.vector_store %arg7[%c0_5, %c32], %2 {strides = array<i32>} : memref<2x48xf32, #tpu.memory_space<vmem>>, vector<2x16xf32>,
    %c0_6 = arith.constant 0 : index
    %c0_7 = arith.constant 0 : index
    %4 = vector.load %arg7[%c0_6, %c0_7] : memref<2x48xf32, #tpu.memory_space<vmem>>, vector<2x48xf32>
    %c0_8 = arith.constant 0 : index
    %c0_9 = arith.constant 0 : index
    %5 = vector.load %arg4[%c0_8, %c0_9] : memref<48x64xf32, #tpu.memory_space<vmem>>, vector<48x64xf32>
    %cst = arith.constant dense<0.000000e+00> : vector<2x64xf32>
    %6 = tpu.matmul %4, %5, %cst {dimension_numbers = #tpu.dot_dimension_numbers<[1], [0], [0], [1], [0, 0, 1, 1], [], []>} : vector<2x48xf32>, vector<48x64xf32>, vector<2x64xf32> -> vector<2x64xf32>
    %c0_10 = arith.constant 0 : index
    %c0_11 = arith.constant 0 : index
    %7 = vector.load %arg5[%c0_10, %c0_11] : memref<1x64xf32, #tpu.memory_space<vmem>>, vector<1x64xf32>
    %8 = vector.broadcast %7 : vector<1x64xf32> to vector<2x64xf32>
    %9 = arith.addf %6, %8 : vector<2x64xf32>
    %c0_12 = arith.constant 0 : index
    %c0_13 = arith.constant 0 : index
    %10 = vector.load %arg6[%c0_12, %c0_13] : memref<2x64xf32, #tpu.memory_space<vmem>>, vector<2x64xf32>
    tpu.vector_store %arg6[%c0_12, %c0_13], %9 {strides = array<i32>} : memref<2x64xf32, #tpu.memory_space<vmem>>, vector<2x64xf32>,
    return
  }
  func.func @transform_0(%arg0: i32, %arg1: i32) -> (i32, i32) {
    %c0_i32 = arith.constant 0 : i32
    %c0_i32_0 = arith.constant 0 : i32
    return %arg0, %c0_i32 : i32, i32
  }
  func.func @transform_1(%arg0: i32, %arg1: i32) -> (i32, i32) {
    %c0_i32 = arith.constant 0 : i32
    %c0_i32_0 = arith.constant 0 : i32
    return %arg0, %c0_i32 : i32, i32
  }
  func.func @transform_2(%arg0: i32, %arg1: i32) -> (i32, i32) {
    %c0_i32 = arith.constant 0 : i32
    %c0_i32_0 = arith.constant 0 : i32
    return %c0_i32, %arg1 : i32, i32
  }
  func.func @transform_3(%arg0: i32, %arg1: i32) -> (i32, i32) {
    %c0_i32 = arith.constant 0 : i32
    %c0_i32_0 = arith.constant 0 : i32
    return %c0_i32, %arg1 : i32, i32
  }
  func.func @transform_4(%arg0: i32, %arg1: i32) -> (i32, i32) {
    %c0_i32 = arith.constant 0 : i32
    return %arg0, %arg1 : i32, i32
  }
}

</mosaic_0001>

<bundles_post_ra>
// kernel: concat_embedding_latent_z.1
= control target key start
LH: loop header
LB: loop body
LE: loop exit
PB: predicated region body
PF: predicated region fallthrough
CT: control target
= control target key end

     0   :  { %9 = vsyncpa [#allocation4], 0  ;;  %s357_s0 = inlined_call_operand.hbm [shape: f32[2,32], index: 0, kind: input, shape index: {}]   ;;  %s358_s1 = inlined_call_operand.vmem [shape: f32[2,16], index: 1, kind: input, shape index: {}]   ;;  %s359_s2 = inlined_call_operand.hbm [shape: f32[48,64], index: 2, kind: input, shape index: {}]   ;;  %s360_s3 = inlined_call_operand.vmem [shape: f32[1,64], index: 3, kind: input, shape index: {}]   ;;  %s361_s4 = inlined_call_operand.hbm [shape: f32[2,64], index: 4, kind: output, shape index: {}]  }
   0x1   :  { %10 = vsyncpa [#allocation7], 0 }
   0x2   :  { %11 = vsyncpa [#allocation5], 0  ;;  %s274_s15 = smov [#allocation3]   ;;  %s275_s17 = smov [#allocation6]  }
   0x3   :  { %s18_s16 = sshll.u32 %s274_s15, 4  ;;  %s29_s18 = sshll.u32 %s275_s17, 4  ;;  %s19_s16 = int_to_ptr.vmem [resolvable:$true] %s18_s16  ;;  %s308_s18 = int_to_ptr.vmem [resolvable:$true] %s29_s18 }
   0x4   :  { %s202_s21 = scalar_lea.hbm %s357_s0, 32 }
   0x5   :  { %p203_p0 = scmp.ne.s32.totalorder %s357_s0, %s202_s21  ;;  %p206_p1 = scmp.lt.u32.totalorder %s202_s21, %s357_s0 }
   0x7   :  { %p208_p2 = pnand %p206_p1, %p203_p0 }
   0x9   :  { %211 = shalt.err (!%p208_p2)
}
   0xa   :  { %s212_s26 = scalar_lea.vmem %s19_s16, 32  ;;  %p217_p4 = scmp.lt.s32.totalorder %s19_s16, %s19_s16 }
   0xb   :  { %p213_p3 = scmp.ne.s32.totalorder %s19_s16, %s212_s26  ;;  %p218_p5 = scmp.lt.s32.totalorder %s212_s26, %s212_s26 }
   0xd   :  { %p219_p6 = por %p218_p5, %p217_p4 }
   0xf   :  { %p220_p7 = pnand %p219_p6, %p213_p3 }
  0x11   :  { %223 = shalt.err (!%p220_p7)
}
  0x12   :  { %21 = dma.hbm_to_vmem [thread:$0]  %s357_s0, 32, %s19_s16, [#allocation4]  }
  0x13   :  { %s224_s5 = scalar_lea.hbm %s359_s2, 768 }
  0x14   :  { %p225_p8 = scmp.ne.s32.totalorder %s359_s2, %s224_s5  ;;  %p228_p9 = scmp.lt.u32.totalorder %s224_s5, %s359_s2 }
  0x16   :  { %p230_p10 = pnand %p228_p9, %p225_p8 }
  0x18   :  { %233 = shalt.err (!%p230_p10)
}
  0x19   :  { %s234_s10 = scalar_lea.vmem %s308_s18, 768  ;;  %p239_p12 = scmp.lt.s32.totalorder %s308_s18, %s308_s18 }
  0x1a   :  { %p235_p11 = scmp.ne.s32.totalorder %s308_s18, %s234_s10  ;;  %p240_p13 = scmp.lt.s32.totalorder %s234_s10, %s234_s10 }
  0x1c   :  { %p241_p0 = por %p240_p13, %p239_p12 }
  0x1e   :  { %p242_p1 = pnand %p241_p0, %p235_p11 }
  0x20   :  { %245 = shalt.err (!%p242_p1)
}
  0x21   :  { %s276_s0 = smov 128   ;;  %s277_s11 = smov 8  }
  0x22   :  { %35 = dma.hbm_to_vmem [thread:$0]  %s359_s2, 768, %s308_s18, [#allocation7], %s276_s0, %s276_s0, %s277_s11  }
  0x23   :  { %268 = dma.done.wait [#allocation4], 32  }
  0x24   :  { %269 = vsyncadd [#allocation4], 4294967264 }
  0x25   :  { %270 = dma.done.wait [#allocation7], 768  }
  0x26   :  { %271 = vsyncadd [#allocation7], 4294966528  ;;  %v278_v0 = vmov 0.0|0.0   ;;  %vm279_vm0 = vmmov 0   ;;  %v280_v1 = vmov 0.0   ;;  %vm45_vm1 = vcmask 254976  }
  0x27   :  { %184 = vmatprep.subr.bf16.mxu0 %v278_v0  ;;  %181 = vmatprep.mubr.msk.f32.mxu0 %vm279_vm0, %v280_v1  ;;  %v47_v2 = vld [vmem:[%s358_s1] sm:$0x3]  ;;  %v55_v3 = vld [vmem:[#allocation6] sm:$0xff]  ;;  %v56_v4 = vld [vmem:[#allocation6 + $0x8] sm:$0xff]  ;;  %s281_s16 = smov 32   ;;  %vm52_vm2 = vcmask 386304  }
  0x28   :  { %49 = vrot.lane.b32.xlu0 %v47_v2, %s281_s16  ;;  %v185_v5 = vpack.c.bf16 %v56_v4, %v55_v3  ;;  %v44_v6 = vld [vmem:[#allocation3] sm:$0x3]  ;;  %v57_v7 = vld [vmem:[#allocation6 + $0x10] sm:$0xff]  ;;  %v59_v10 = vld [vmem:[#allocation6 + $0x20] sm:$0xff]  ;;  %vm68_vm3 = vcmask 392192   ;;  %s282_s17 = smov [#allocation8]  }
  0x29   :  { %v58_v8 = vld [vmem:[#allocation6 + $0x18] sm:$0xff]  ;;  %46 = vst.msk [vmem:[#allocation2] sm:$0x3] %vm45_vm1, %v44_v6  ;;  %v60_v11 = vld [vmem:[#allocation6 + $0x28] sm:$0xff]  ;;  %s150_s18 = sshll.u32 %s282_s17, 4  ;;  %vm142_vm4 = vcmask 517120   ;;  %s151_s18 = int_to_ptr.vmem [resolvable:$true] %s150_s18 }
  0x2a   :  { %186 = vmatpush3.bf16.msra.mxu0 %v185_v5  ;;  %v188_v9 = vpack.c.bf16 %v58_v8, %v57_v7  ;;  %v191_v12 = vpack.c.bf16 %v60_v11, %v59_v10  ;;  %v160_v15 = vld [vmem:[%s360_s3] ss:$0 sm:$0xff]  ;;  %s246_s19 = scalar_lea.vmem %s151_s18, 32  ;;  %p251_p3 = scmp.lt.s32.totalorder %s151_s18, %s151_s18 }
  0x2b   :  { %187 = vmatprep.subr.bf16.mxu0 %v278_v0  ;;  %p247_p2 = scmp.ne.s32.totalorder %s151_s18, %s246_s19  ;;  %p252_p4 = scmp.lt.s32.totalorder %s246_s19, %s246_s19 }
  0x2d   :  { %p253_p5 = por %p252_p4, %p251_p3 }
  0x2e   :  { %189 = vmatpush3.bf16.msra.mxu0 %v188_v9 }
  0x2f   :  { %190 = vmatprep.subr.bf16.mxu0 %v278_v0  ;;  %p254_p6 = pnand %p253_p5, %p247_p2 }
  0x32   :  { %192 = vmatpush3.bf16.msra.mxu0 %v191_v12 }
  0x9a   :  { %v50_v13 = vpop.permute.xlu0 %49 }
  0x9b   :  { %53 = vst.msk [vmem:[#allocation2] sm:$0x3] %vm52_vm2, %v50_v13 }
  0xa2   :  { %v54_v14 = vld [vmem:[#allocation2] sm:$0x3] }
  0xa3   :  { %182 = vmatmul.mubr.msk.f32.vlgmr.msra.gmra.mrb[0].mxu0 %vm68_vm3, %v54_v14 }
 0x176   :  { %v138_v16 = vpop.f32.mrb[0].mxu0 }
 0x177   :  { %v139_v17 = vadd.f32 %v160_v15, %v138_v16  ;;  %v183_v18 = vpop.f32.mrb[1].mxu0 }
 0x179   :  { %143 = vst.msk [vmem:[#allocation8] sm:$0x3] %vm142_vm4, %v139_v17 }
 0x17a   :  { %257 = shalt.err (!%p254_p6)
}
 0x17b   :  { %s258_s22 = scalar_lea.hbm %s361_s4, 32 }
 0x17c   :  { %p259_p7 = scmp.ne.s32.totalorder %s361_s4, %s258_s22  ;;  %p262_p8 = scmp.lt.u32.totalorder %s258_s22, %s361_s4 }
 0x17e   :  { %p264_p9 = pnand %p262_p8, %p259_p7 }
 0x180   :  { %267 = shalt.err (!%p264_p9)
}
 0x181   :  { %153 = dma.vmem_to_hbm [thread:$0]  %s151_s18, 32, %s361_s4, [#allocation5]  }
 0x182   :  { %272 = dma.done.wait [#allocation5], 32  }
 0x183   :  { %273 = vsyncadd [#allocation5], 4294967264 }
 0x184   :  { %157 = vsyncpa [#allocation4], 1 }
 0x185   :  { %158 = vsyncpa [#allocation7], 1 }
 0x186   :  { %159 = vsyncpa [#allocation5], 1 }

</bundles_post_ra>
